<compile_context>
chip_gen: v6e
topology: v6e:2x2x1
jax: 0.10.0
libtpu: 0.0.40
codegen_flags: <defaults>
</compile_context>

<pallas_src>
import math

import jax
import jax.numpy as jnp
from jax.experimental import pallas as pl
from jax.experimental.pallas import tpu as pltpu

LANE = 128
MAX_ROW_TILE = 1024  # 1024 x 128 x 4B = 512 KiB per array per tile


def _round_up(a, b):
    return (a + b - 1) // b * b


def _norm_x_kernel(params_ref, x_ref, xo_ref):
    # params_ref (SMEM): [mean, inv_std, inv_var]
    mean = params_ref[0]
    inv_std = params_ref[1]
    xo_ref[...] = ((x_ref[...].astype(jnp.float32) - mean) * inv_std).astype(
        xo_ref.dtype
    )


def _norm_xs_kernel(params_ref, x_ref, s_ref, xo_ref, so_ref):
    # params_ref (SMEM): [mean, inv_std, inv_var]
    mean = params_ref[0]
    inv_std = params_ref[1]
    inv_var = params_ref[2]
    xo_ref[...] = ((x_ref[...].astype(jnp.float32) - mean) * inv_std).astype(
        xo_ref.dtype
    )
    so_ref[...] = (s_ref[...].astype(jnp.float32) * inv_var).astype(so_ref.dtype)


def normalize0_forward(x, sigma, mean, std):
    """Pallas forward pass.

    x: arbitrary-shaped array (e.g. NCHW [B,C,H,W]).
    sigma: python/0-d scalar (PyTorch default 0) or array broadcastable to x.
    mean, std: scalar parameters (from X0 at module init).
    Returns ((x - mean)/std, sigma/std**2).
    """
    orig_shape = x.shape
    dtype = x.dtype

    total = math.prod(orig_shape) if orig_shape else 1

    # Lane-dense slab: rows of 128 lanes, rows padded to a multiple of 8,
    # then to a multiple of the row tile.
    rows = _round_up(pl.cdiv(total, LANE), 8)
    row_tile = min(MAX_ROW_TILE, rows)  # rows is a multiple of 8 -> tile is too
    rows_padded = _round_up(rows, row_tile)
    padded_total = rows_padded * LANE
    grid = (rows_padded // row_tile,)

    inv_std = (1.0 / std).astype(jnp.float32)
    inv_var = inv_std * inv_std
    params = jnp.stack([mean.astype(jnp.float32), inv_std, inv_var])  # (3,) SMEM

    itemsize = jnp.dtype(dtype).itemsize

    def to_slab(a):
        flat = jnp.asarray(a, dtype=dtype).reshape(-1)
        flat = jnp.pad(flat, (0, padded_total - total))
        return flat.reshape(rows_padded, LANE)

    def from_slab(slab):
        return slab.reshape(-1)[:total].reshape(orig_shape)

    x2 = to_slab(x)
    tile_spec = pl.BlockSpec((row_tile, LANE), lambda i: (i, 0))
    param_spec = pl.BlockSpec(memory_space=pltpu.SMEM)

    sigma_is_scalar = jnp.ndim(sigma) == 0

    if sigma_is_scalar:
        # Default PyTorch path (Sigma=0): skip the Sigma slab entirely.
        cost = pl.CostEstimate(
            flops=2 * padded_total,
            transcendentals=0,
            bytes_accessed=2 * padded_total * itemsize,
        )
        xo = pl.pallas_call(
            _norm_x_kernel,
            out_shape=jax.ShapeDtypeStruct((rows_padded, LANE), dtype),
            grid_spec=pltpu.PrefetchScalarGridSpec(
                num_scalar_prefetch=0,
                grid=grid,
                in_specs=[param_spec, tile_spec],
                out_specs=tile_spec,
            ),
            compiler_params=pltpu.CompilerParams(
                dimension_semantics=("parallel",)
            ),
            cost_estimate=cost,
        )(params, x2)
        sigma_out = (jnp.asarray(sigma, dtype=jnp.float32) * inv_var).astype(dtype)
        return from_slab(xo), sigma_out

    # Full covariance-map path: x and Sigma both stream through the kernel.
    s2 = to_slab(sigma)
    cost = pl.CostEstimate(
        flops=3 * padded_total,
        transcendentals=0,
        bytes_accessed=4 * padded_total * itemsize,
    )
    xo, so = pl.pallas_call(
        _norm_xs_kernel,
        out_shape=(
            jax.ShapeDtypeStruct((rows_padded, LANE), dtype),
            jax.ShapeDtypeStruct((rows_padded, LANE), dtype),
        ),
        grid_spec=pltpu.PrefetchScalarGridSpec(
            num_scalar_prefetch=0,
            grid=grid,
            in_specs=[param_spec, tile_spec, tile_spec],
            out_specs=[tile_spec, tile_spec],
        ),
        compiler_params=pltpu.CompilerParams(
            dimension_semantics=("parallel",)
        ),
        cost_estimate=cost,
    )(params, x2, s2)
    return from_slab(xo), from_slab(so)


if __name__ == "__main__":
    key = jax.random.PRNGKey(0)
    k0, k1, k2 = jax.random.split(key, 3)

    # X0: reference data used at module __init__ to derive scalar mean/std.
    X0 = jax.random.normal(k0, (64, 4), dtype=jnp.float32) * 3.0 + 1.5
    mean = X0.mean()
    # match torch.Tensor.std() default (unbiased, ddof=1)
    std = jnp.sqrt(jnp.sum((X0 - mean) ** 2) / (X0.size - 1))

    # forward inputs
    x = jax.random.normal(k1, (2, 4, 16, 16), dtype=jnp.float32)
    Sigma = jnp.abs(jax.random.normal(k2, (2, 4, 16, 16), dtype=jnp.float32))

    # array-Sigma path
    x_norm, sigma_norm = normalize0_forward(x, Sigma, mean, std)
    jax.block_until_ready((x_norm, sigma_norm))
    x_ref = (x - mean) / std
    s_ref = Sigma / std**2
    assert jnp.allclose(x_norm, x_ref, atol=1e-5, rtol=1e-5)
    assert jnp.allclose(sigma_norm, s_ref, atol=1e-5, rtol=1e-5)

    # PyTorch default Sigma=0 path (scalar -> no Sigma slab traffic)
    x_norm0, sigma0 = normalize0_forward(x, 0.0, mean, std)
    jax.block_until_ready((x_norm0, sigma0))
    assert jnp.allclose(x_norm0, x_ref, atol=1e-5, rtol=1e-5)
    assert jnp.allclose(sigma0, 0.0)

    # odd-sized input (total not divisible by 128) exercises the padding path
    x_odd = jax.random.normal(k1, (3, 5, 7, 11), dtype=jnp.float32)
    xo_odd, so_odd = normalize0_forward(x_odd, 0.0, mean, std)
    jax.block_until_ready(xo_odd)
    assert jnp.allclose(xo_odd, (x_odd - mean) / std, atol=1e-5, rtol=1e-5)

    print("KERNEL_OK")
</pallas_src>

<mosaic_0001>
module attributes {stable_mosaic.version = 11 : i64} {
  func.func @_norm_xs_kernel(%arg0: i32, %arg1: memref<3xf32, #tpu.memory_space<smem>>, %arg2: memref<16x128xf32, #tpu.memory_space<vmem>>, %arg3: memref<16x128xf32, #tpu.memory_space<vmem>>, %arg4: memref<16x128xf32, #tpu.memory_space<vmem>>, %arg5: memref<16x128xf32, #tpu.memory_space<vmem>>) attributes {dimension_semantics = [#tpu.dimension_semantics<parallel>], iteration_bounds = array<i64: 1>, scalar_prefetch = 0 : i64, scratch_operands = 0 : i64, tpu.core_type = #tpu.core_type<tc>, window_params = [{transform_indices = @transform_0, window_bounds = array<i64: 3>}, {transform_indices = @transform_1, window_bounds = array<i64: 16, 128>}, {transform_indices = @transform_2, window_bounds = array<i64: 16, 128>}, {transform_indices = @transform_3, window_bounds = array<i64: 16, 128>}, {transform_indices = @transform_4, window_bounds = array<i64: 16, 128>}]} {
    %c0 = arith.constant 0 : index
    %0 = memref.load %arg1[%c0] : memref<3xf32, #tpu.memory_space<smem>>
    %c1 = arith.constant 1 : index
    %1 = memref.load %arg1[%c1] : memref<3xf32, #tpu.memory_space<smem>>
    %c2 = arith.constant 2 : index
    %2 = memref.load %arg1[%c2] : memref<3xf32, #tpu.memory_space<smem>>
    %c0_0 = arith.constant 0 : index
    %c0_1 = arith.constant 0 : index
    %3 = vector.load %arg2[%c0_0, %c0_1] : memref<16x128xf32, #tpu.memory_space<vmem>>, vector<16x128xf32>
    %4 = vector.broadcast %0 : f32 to vector<16x128xf32>
    %5 = arith.subf %3, %4 : vector<16x128xf32>
    %6 = vector.broadcast %1 : f32 to vector<16x128xf32>
    %7 = arith.mulf %5, %6 : vector<16x128xf32>
    %c0_2 = arith.constant 0 : index
    %c0_3 = arith.constant 0 : index
    %8 = vector.load %arg4[%c0_2, %c0_3] : memref<16x128xf32, #tpu.memory_space<vmem>>, vector<16x128xf32>
    tpu.vector_store %arg4[%c0_2, %c0_3], %7 {strides = array<i32>} : memref<16x128xf32, #tpu.memory_space<vmem>>, vector<16x128xf32>,
    %c0_4 = arith.constant 0 : index
    %c0_5 = arith.constant 0 : index
    %9 = vector.load %arg3[%c0_4, %c0_5] : memref<16x128xf32, #tpu.memory_space<vmem>>, vector<16x128xf32>
    %10 = vector.broadcast %2 : f32 to vector<16x128xf32>
    %11 = arith.mulf %9, %10 : vector<16x128xf32>
    %c0_6 = arith.constant 0 : index
    %c0_7 = arith.constant 0 : index
    %12 = vector.load %arg5[%c0_6, %c0_7] : memref<16x128xf32, #tpu.memory_space<vmem>>, vector<16x128xf32>
    tpu.vector_store %arg5[%c0_6, %c0_7], %11 {strides = array<i32>} : memref<16x128xf32, #tpu.memory_space<vmem>>, vector<16x128xf32>,
    return
  }
  func.func @transform_0(%arg0: i32) -> i32 {
    %c0_i32 = arith.constant 0 : i32
    %c0_i32_0 = arith.constant 0 : i32
    return %c0_i32 : i32
  }
  func.func @transform_1(%arg0: i32) -> (i32, i32) {
    %c0_i32 = arith.constant 0 : i32
    %c0_i32_0 = arith.constant 0 : i32
    return %arg0, %c0_i32 : i32, i32
  }
  func.func @transform_2(%arg0: i32) -> (i32, i32) {
    %c0_i32 = arith.constant 0 : i32
    %c0_i32_0 = arith.constant 0 : i32
    return %arg0, %c0_i32 : i32, i32
  }
  func.func @transform_3(%arg0: i32) -> (i32, i32) {
    %c0_i32 = arith.constant 0 : i32
    %c0_i32_0 = arith.constant 0 : i32
    return %arg0, %c0_i32 : i32, i32
  }
  func.func @transform_4(%arg0: i32) -> (i32, i32) {
    %c0_i32 = arith.constant 0 : i32
    %c0_i32_0 = arith.constant 0 : i32
    return %arg0, %c0_i32 : i32, i32
  }
}

</mosaic_0001>

<bundles_post_ra>
// kernel: tpu_custom_call.1
= control target key start
LH: loop header
LB: loop body
LE: loop exit
PB: predicated region body
PF: predicated region fallthrough
CT: control target
= control target key end

     0   :  { %10 = vsyncpa [#allocation5], 0  ;;  %s278_s0 = inlined_call_operand.hbm [shape: f32[3], index: 0, kind: input, shape index: {}]   ;;  %s279_s1 = inlined_call_operand.hbm [shape: f32[16,128], index: 1, kind: input, shape index: {}]   ;;  %s280_s2 = inlined_call_operand.hbm [shape: f32[16,128], index: 2, kind: input, shape index: {}]   ;;  %s281_s3 = inlined_call_operand.hbm [shape: f32[16,128], index: 3, kind: output, shape index: {0}]   ;;  %s282_s4 = inlined_call_operand.hbm [shape: f32[16,128], index: 4, kind: output, shape index: {1}]  }
   0x1   :  { %11 = vsyncpa [#allocation3], 0 }
   0x2   :  { %12 = vsyncpa [#allocation8], 0 }
   0x3   :  { %13 = vsyncpa [#allocation4], 0 }
   0x4   :  { %14 = vsyncpa [#allocation11], 0  ;;  %s219_s15 = smov [#allocation2]   ;;  %s220_s18 = smov [#allocation6]  }
   0x5   :  { %22 = dma.hbm_to_smem %s278_s0, 16, %s219_s15, [#allocation5]  }
   0x6   :  { %s28_s19 = sshll.u32 %s220_s18, 4  ;;  %s29_s19 = int_to_ptr.vmem [resolvable:$true] %s28_s19 }
   0x7   :  { %s137_s20 = scalar_lea.vmem %s29_s19, 256  ;;  %p142_p1 = scmp.lt.s32.totalorder %s29_s19, %s29_s19 }
   0x8   :  { %p138_p0 = scmp.ne.s32.totalorder %s29_s19, %s137_s20  ;;  %p143_p2 = scmp.lt.s32.totalorder %s137_s20, %s137_s20 }
   0xa   :  { %p144_p3 = por %p143_p2, %p142_p1 }
   0xc   :  { %p145_p4 = pnand %p144_p3, %p138_p0 }
   0xe   :  { %148 = shalt.err (!%p145_p4)
}
   0xf   :  { %s221_s21 = smov 128   ;;  %s222_s22 = smov 8  }
  0x10   :  { %34 = dma.hbm_to_vmem [thread:$0]  %s279_s1, 256, %s29_s19, [#allocation3], %s221_s21, %s221_s21, %s222_s22  }
  0x11   :  { %s223_s0 = smov [#allocation7]  }
  0x12   :  { %s40_s25 = sshll.u32 %s223_s0, 4  ;;  %s41_s25 = int_to_ptr.vmem [resolvable:$true] %s40_s25 }
  0x13   :  { %s157_s26 = scalar_lea.vmem %s41_s25, 256  ;;  %p162_p6 = scmp.lt.s32.totalorder %s41_s25, %s41_s25 }
  0x14   :  { %p158_p5 = scmp.ne.s32.totalorder %s41_s25, %s157_s26  ;;  %p163_p7 = scmp.lt.s32.totalorder %s157_s26, %s157_s26 }
  0x16   :  { %p164_p8 = por %p163_p7, %p162_p6 }
  0x18   :  { %p165_p9 = pnand %p164_p8, %p158_p5 }
  0x1a   :  { %168 = shalt.err (!%p165_p9)
}
  0x1b   :  { %46 = dma.hbm_to_vmem [thread:$0]  %s280_s2, 256, %s41_s25, [#allocation8], %s221_s21, %s221_s21, %s222_s22  }
  0x1c   :  { %209 = dma.done.wait [#allocation5], 16  }
  0x1d   :  { %210 = vsyncadd [#allocation5], 4294967280 }
  0x1e   :  { %211 = dma.done.wait [#allocation3], 256  }
  0x1f   :  { %212 = vsyncadd [#allocation3], 4294967040 }
  0x20   :  { %213 = dma.done.wait [#allocation8], 256  }
  0x21   :  { %214 = vsyncadd [#allocation8], 4294967040 }
  0x22   :  { %56 = sfence }
  0x23   :  { %s57_s1 = sld [smem:[#allocation2]]  ;;  %v60_v0 = vld [vmem:[#allocation6] sm:$0xff]  ;;  %v61_v1 = vld [vmem:[#allocation6 + $0x8] sm:$0xff]  ;;  %v70_v3 = vld [vmem:[#allocation7] sm:$0xff]  ;;  %s224_s5 = smov [#allocation9]  }
  0x24   :  { %s112_s29 = sld [smem:[#allocation2 + $0x1]]  ;;  %v71_v4 = vld [vmem:[#allocation7 + $0x8] sm:$0xff]  ;;  %s82_s6 = sshll.u32 %s224_s5, 4  ;;  %s83_s6 = int_to_ptr.vmem [resolvable:$true] %s82_s6 }
  0x25   :  { %s113_s30 = sld [smem:[#allocation2 + $0x2]]  ;;  %s225_s2 = smov [#allocation10]  }
  0x26   :  { %s94_s7 = sshll.u32 %s225_s2, 4  ;;  %s169_s8 = scalar_lea.vmem %s83_s6, 256  ;;  %s95_s7 = int_to_ptr.vmem [resolvable:$true] %s94_s7 }
  0x27   :  { %p170_p10 = scmp.ne.s32.totalorder %s83_s6, %s169_s8  ;;  %p174_p11 = scmp.lt.s32.totalorder %s83_s6, %s83_s6 }
  0x28   :  { %p175_p12 = scmp.lt.s32.totalorder %s169_s8, %s169_s8 }
  0x29   :  { %v62_v2 = vstv %s57_s1 }
  0x2a   :  { %v63_v5 = vsub.f32 %v60_v0, %v62_v2  ;;  %v65_v6 = vstv %s112_s29  ;;  %v64_v7 = vsub.f32 %v61_v1, %v62_v2  ;;  %p176_p13 = por %p175_p12, %p174_p11 }
  0x2b   :  { %v72_v8 = vstv %s113_s30 }
  0x2c   :  { %v66_v9 = vmul.f32 %v65_v6, %v63_v5  ;;  %v67_v10 = vmul.f32 %v65_v6, %v64_v7  ;;  %v73_v11 = vmul.f32 %v72_v8, %v70_v3  ;;  %v74_v12 = vmul.f32 %v72_v8, %v71_v4  ;;  %p177_p0 = pnand %p176_p13, %p170_p10 }
  0x2e   :  { %68 = vst [vmem:[#allocation9] sm:$0xff] %v66_v9  ;;  %69 = vst [vmem:[#allocation9 + $0x8] sm:$0xff] %v67_v10 }
  0x2f   :  { %75 = vst [vmem:[#allocation10] sm:$0xff] %v73_v11  ;;  %76 = vst [vmem:[#allocation10 + $0x8] sm:$0xff] %v74_v12 }
  0x30   :  { %180 = shalt.err (!%p177_p0)
}
  0x31   :  { %88 = dma.vmem_to_hbm [thread:$0]  %s83_s6, 256, %s281_s3, [#allocation4], %s221_s21, %s221_s21, %s222_s22  }
  0x32   :  { %s189_s11 = scalar_lea.vmem %s95_s7, 256  ;;  %p194_p2 = scmp.lt.s32.totalorder %s95_s7, %s95_s7 }
  0x33   :  { %p190_p1 = scmp.ne.s32.totalorder %s95_s7, %s189_s11  ;;  %p195_p3 = scmp.lt.s32.totalorder %s189_s11, %s189_s11 }
  0x35   :  { %p196_p4 = por %p195_p3, %p194_p2 }
  0x37   :  { %p197_p5 = pnand %p196_p4, %p190_p1 }
  0x39   :  { %200 = shalt.err (!%p197_p5)
}
  0x3a   :  { %100 = dma.vmem_to_hbm [thread:$0]  %s95_s7, 256, %s282_s4, [#allocation11], %s221_s21, %s221_s21, %s222_s22  }
  0x3b   :  { %215 = dma.done.wait [#allocation4], 256  }
  0x3c   :  { %216 = vsyncadd [#allocation4], 4294967040 }
  0x3d   :  { %217 = dma.done.wait [#allocation11], 256  }
  0x3e   :  { %218 = vsyncadd [#allocation11], 4294967040 }
  0x3f   :  { %107 = vsyncpa [#allocation3], 1 }
  0x40   :  { %108 = vsyncpa [#allocation8], 1 }
  0x41   :  { %109 = vsyncpa [#allocation4], 1 }
  0x42   :  { %110 = vsyncpa [#allocation11], 1 }
  0x43   :  { %111 = vsyncpa [#allocation5], 1 }

</bundles_post_ra>
